<compile_context>
chip_gen: v5e
topology: v5e:2x2
jax: 0.10.0
libtpu: 0.0.40
codegen_flags: <defaults>
</compile_context>

<pallas_src>
import jax
import jax.numpy as jnp
import numpy as np
from jax.experimental import pallas as pl
from jax.experimental.pallas import tpu as pltpu


def _round_up(x, m):
    return ((x + m - 1) // m) * m


def _nbytes(dtype):
    return jnp.dtype(dtype).itemsize


def _pad2d(a, rows, cols):
    pr, pc = rows - a.shape[0], cols - a.shape[1]
    if pr or pc:
        a = jnp.pad(a, ((0, pr), (0, pc)))
    return a


def _pick_tile(n, max_tile, align):
    """Tile size (multiple of `align`, <= max_tile) minimizing padding of n, preferring larger tiles."""
    n_al = _round_up(n, align)
    if n_al <= max_tile:
        return n_al
    best_tile, best_pad = align, _round_up(n_al, align)
    for t in range(align, max_tile + 1, align):
        padded = _round_up(n_al, t)
        if padded < best_pad or (padded == best_pad and t > best_tile):
            best_pad, best_tile = padded, t
    return best_tile


# ---------------------------------------------------------------------------
# Stage 1: h2 = tanh(tanh(x @ W1 + b1) @ W2 + b2), tiled over batch only.
# W1/b1/W2/b2 are full-array VMEM-resident (single copy, no pipelining).
# ---------------------------------------------------------------------------
def _h2_kernel(x_ref, w1_ref, b1_ref, w2_ref, b2_ref, h2_ref):
    h1 = jnp.tanh(
        jnp.dot(x_ref[...], w1_ref[...], preferred_element_type=jnp.float32)
        + b1_ref[...].astype(jnp.float32)
    )
    h2 = jnp.tanh(
        jnp.dot(h1.astype(w2_ref.dtype), w2_ref[...],
                preferred_element_type=jnp.float32)
        + b2_ref[...].astype(jnp.float32)
    )
    h2_ref[...] = h2.astype(h2_ref.dtype)  # stored pre-cast to the layer-3 stream dtype


# ---------------------------------------------------------------------------
# Stage 2: out = h2 @ W3 + b3, grid = (vocab tiles OUTER, batch tiles inner)
# so each W3 / b3 block is fetched from HBM exactly once. Output tiles are
# lane-dense (tv multiple of 128) and written exactly once -> both axes parallel.
# ---------------------------------------------------------------------------
def _vocab_proj_kernel(h2_ref, w3_ref, b3_ref, o_ref):
    o_ref[...] = (
        jnp.dot(h2_ref[...], w3_ref[...], preferred_element_type=jnp.float32)
        + b3_ref[...].astype(jnp.float32)
    ).astype(o_ref.dtype)


def dnn_decoder(x, w1, b1, w2, b2, w3, b3, *, tb_max=512, tv_max=2048,
                stream_dtype=None):
    """x: (B, D); wI: (in, out); bI: (out,) or (1, out). Returns (B, num_words).

    stream_dtype: dtype used to stream W3 and the cached h2 through the big
    layer-3 matmul (e.g. jnp.bfloat16 halves the dominant HBM traffic).
    None keeps the parameter dtype (exact module semantics). Accumulation is
    always f32 via preferred_element_type.
    """
    B, D = x.shape
    H = w1.shape[1]
    V = w3.shape[1]
    out_dtype = x.dtype
    stream = jnp.dtype(stream_dtype) if stream_dtype is not None else jnp.dtype(w3.dtype)

    # Aligned / padded sizes (zero padding is exact for this MLP).
    D_pad = _round_up(D, 128)
    H_pad = _round_up(H, 128)
    tb = _pick_tile(B, tb_max, 8)          # batch tile, multiple of 8, minimal over-padding
    B_pad = _round_up(B, tb)
    tv = _pick_tile(V, tv_max, 128)        # vocab tile, multiple of 128 (lane-dense stores)
    V_pad = _round_up(V, tv)

    xp = _pad2d(x, B_pad, D_pad)
    w1p = _pad2d(w1, D_pad, H_pad)
    b1p = _pad2d(jnp.reshape(b1, (1, -1)), 1, H_pad)
    w2p = _pad2d(w2, H_pad, H_pad)
    b2p = _pad2d(jnp.reshape(b2, (1, -1)), 1, H_pad)
    w3p = _pad2d(w3, H_pad, V_pad).astype(stream)
    b3p = _pad2d(jnp.reshape(b3, (1, -1)), 1, V_pad)

    n_b = B_pad // tb
    n_v = V_pad // tv

    resident = pl.BlockSpec(memory_space=pltpu.MemorySpace.VMEM)  # single-copy, non-pipelined

    # --- stage 1: compute h2 once ---------------------------------------------------
    stage1_vmem = (
        2 * tb * D_pad * _nbytes(x.dtype)          # x blocks (double-buffered)
        + 2 * tb * H_pad * _nbytes(stream)         # h2 output blocks
        + (D_pad * H_pad + H_pad * H_pad + 2 * H_pad) * _nbytes(w1.dtype)  # resident params
    )
    h2 = pl.pallas_call(
        _h2_kernel,
        out_shape=jax.ShapeDtypeStruct((B_pad, H_pad), stream),
        grid_spec=pltpu.PrefetchScalarGridSpec(
            num_scalar_prefetch=0,
            grid=(n_b,),
            in_specs=[
                pl.BlockSpec((tb, D_pad), lambda i: (i, 0)),   # x batch tile
                resident,                                      # W1 (VMEM resident)
                resident,                                      # b1
                resident,                                      # W2
                resident,                                      # b2
            ],
            out_specs=pl.BlockSpec((tb, H_pad), lambda i: (i, 0)),
        ),
        compiler_params=pltpu.CompilerParams(
            dimension_semantics=("parallel",),
            vmem_limit_bytes=int(min(stage1_vmem + (16 << 20), 56 << 20)),
        ),
    )(xp, w1p, b1p, w2p, b2p)

    # --- stage 2: vocab projection, W3 streamed exactly once ------------------------
    stage2_vmem = 2 * (
        tb * H_pad * _nbytes(stream)       # h2 blocks
        + H_pad * tv * _nbytes(stream)     # W3 blocks
        + tv * _nbytes(b3p.dtype)          # b3 blocks
        + tb * tv * _nbytes(out_dtype)     # output blocks
    )
    out_padded = pl.pallas_call(
        _vocab_proj_kernel,
        out_shape=jax.ShapeDtypeStruct((B_pad, V_pad), out_dtype),
        grid_spec=pltpu.PrefetchScalarGridSpec(
            num_scalar_prefetch=0,
            grid=(n_v, n_b),  # vocab OUTER -> each W3 block DMA'd once total
            in_specs=[
                pl.BlockSpec((tb, H_pad), lambda j, i: (i, 0)),   # cached h2 (small)
                pl.BlockSpec((H_pad, tv), lambda j, i: (0, j)),   # W3 streamed over vocab
                pl.BlockSpec((1, tv), lambda j, i: (0, j)),       # b3 streamed over vocab
            ],
            out_specs=pl.BlockSpec((tb, tv), lambda j, i: (i, j)),
        ),
        compiler_params=pltpu.CompilerParams(
            # Both axes independent (h2 precomputed): megacore can shard the vocab
            # axis even when there is a single batch tile (v7x).
            dimension_semantics=("parallel", "parallel"),
            vmem_limit_bytes=int(min(stage2_vmem + (16 << 20), 56 << 20)),
        ),
    )(h2, w3p, b3p)

    return out_padded[:B, :V]


def reference(x, w1, b1, w2, b2, w3, b3):
    h1 = jnp.tanh(x @ w1 + jnp.reshape(b1, (1, -1)))
    h2 = jnp.tanh(h1 @ w2 + jnp.reshape(b2, (1, -1)))
    return h2 @ w3 + jnp.reshape(b3, (1, -1))


if __name__ == "__main__":
    # Small shapes consistent with the module (x is (batch, doc_emb_dim));
    # h_dim / num_words intentionally non-aligned to exercise the padding path.
    batch = 16
    doc_emb_dim = 32
    h_dim = 300
    num_words = 1000

    key = jax.random.PRNGKey(0)
    kx, k1, k2, k3, k4, k5, k6 = jax.random.split(key, 7)

    x = jax.random.normal(kx, (batch, doc_emb_dim), dtype=jnp.float32)

    # PyTorch-Linear-style uniform init, stored as (in, out) for x @ W + b.
    def init_linear(kw, kb, fan_in, fan_out):
        bound = 1.0 / np.sqrt(fan_in)
        w = jax.random.uniform(kw, (fan_in, fan_out), jnp.float32, -bound, bound)
        b = jax.random.uniform(kb, (1, fan_out), jnp.float32, -bound, bound)
        return w, b

    w1, b1 = init_linear(k1, k2, doc_emb_dim, h_dim)
    w2, b2 = init_linear(k3, k4, h_dim, h_dim)
    w3, b3 = init_linear(k5, k6, h_dim, num_words)

    ref = reference(x, w1, b1, w2, b2, w3, b3)

    # Exact-semantics path (streams in the parameter dtype, f32 here).
    out = dnn_decoder(x, w1, b1, w2, b2, w3, b3)
    out = jax.block_until_ready(out)
    np.testing.assert_allclose(np.asarray(out), np.asarray(ref), rtol=2e-5, atol=2e-5)

    # High-throughput path: W3 / h2 streamed in bf16, f32 accumulation.
    out_bf16 = dnn_decoder(x, w1, b1, w2, b2, w3, b3, stream_dtype=jnp.bfloat16)
    out_bf16 = jax.block_until_ready(out_bf16)
    np.testing.assert_allclose(np.asarray(out_bf16), np.asarray(ref), rtol=5e-2, atol=5e-2)

    print("KERNEL_OK")
</pallas_src>

<mosaic_0001>
module attributes {stable_mosaic.version = 11 : i64} {
  func.func @_h2_kernel(%arg0: i32, %arg1: memref<16x128xf32, #tpu.memory_space<vmem>>, %arg2: memref<128x384xf32, #tpu.memory_space<vmem>>, %arg3: memref<1x384xf32, #tpu.memory_space<vmem>>, %arg4: memref<384x384xf32, #tpu.memory_space<vmem>>, %arg5: memref<1x384xf32, #tpu.memory_space<vmem>>, %arg6: memref<16x384xf32, #tpu.memory_space<vmem>>) attributes {dimension_semantics = [#tpu.dimension_semantics<parallel>], iteration_bounds = array<i64: 1>, scalar_prefetch = 0 : i64, scratch_operands = 0 : i64, tpu.core_type = #tpu.core_type<tc>, window_params = [{transform_indices = @transform_0, window_bounds = array<i64: 16, 128>}, {pipeline_mode = #tpu.pipeline_mode<synchronous>, transform_indices = @transform_1, window_bounds = array<i64: 128, 384>}, {pipeline_mode = #tpu.pipeline_mode<synchronous>, transform_indices = @transform_2, window_bounds = array<i64: 1, 384>}, {pipeline_mode = #tpu.pipeline_mode<synchronous>, transform_indices = @transform_3, window_bounds = array<i64: 384, 384>}, {pipeline_mode = #tpu.pipeline_mode<synchronous>, transform_indices = @transform_4, window_bounds = array<i64: 1, 384>}, {transform_indices = @transform_5, window_bounds = array<i64: 16, 384>}]} {
    %c0 = arith.constant 0 : index
    %c0_0 = arith.constant 0 : index
    %0 = vector.load %arg1[%c0, %c0_0] : memref<16x128xf32, #tpu.memory_space<vmem>>, vector<16x128xf32>
    %c0_1 = arith.constant 0 : index
    %c0_2 = arith.constant 0 : index
    %1 = vector.load %arg2[%c0_1, %c0_2] : memref<128x384xf32, #tpu.memory_space<vmem>>, vector<128x384xf32>
    %cst = arith.constant dense<0.000000e+00> : vector<16x384xf32>
    %2 = tpu.matmul %0, %1, %cst {dimension_numbers = #tpu.dot_dimension_numbers<[1], [0], [0], [1], [0, 0, 1, 1], [], []>} : vector<16x128xf32>, vector<128x384xf32>, vector<16x384xf32> -> vector<16x384xf32>
    %c0_3 = arith.constant 0 : index
    %c0_4 = arith.constant 0 : index
    %3 = vector.load %arg3[%c0_3, %c0_4] : memref<1x384xf32, #tpu.memory_space<vmem>>, vector<1x384xf32>
    %4 = vector.broadcast %3 : vector<1x384xf32> to vector<16x384xf32>
    %5 = arith.addf %2, %4 : vector<16x384xf32>
    %6 = math.tanh %5 : vector<16x384xf32>
    %c0_5 = arith.constant 0 : index
    %c0_6 = arith.constant 0 : index
    %7 = vector.load %arg4[%c0_5, %c0_6] : memref<384x384xf32, #tpu.memory_space<vmem>>, vector<384x384xf32>
    %cst_7 = arith.constant dense<0.000000e+00> : vector<16x384xf32>
    %8 = tpu.matmul %6, %7, %cst_7 {dimension_numbers = #tpu.dot_dimension_numbers<[1], [0], [0], [1], [0, 0, 1, 1], [], []>} : vector<16x384xf32>, vector<384x384xf32>, vector<16x384xf32> -> vector<16x384xf32>
    %c0_8 = arith.constant 0 : index
    %c0_9 = arith.constant 0 : index
    %9 = vector.load %arg5[%c0_8, %c0_9] : memref<1x384xf32, #tpu.memory_space<vmem>>, vector<1x384xf32>
    %10 = vector.broadcast %9 : vector<1x384xf32> to vector<16x384xf32>
    %11 = arith.addf %8, %10 : vector<16x384xf32>
    %12 = math.tanh %11 : vector<16x384xf32>
    %c0_10 = arith.constant 0 : index
    %c0_11 = arith.constant 0 : index
    %13 = vector.load %arg6[%c0_10, %c0_11] : memref<16x384xf32, #tpu.memory_space<vmem>>, vector<16x384xf32>
    tpu.vector_store %arg6[%c0_10, %c0_11], %12 {strides = array<i32>} : memref<16x384xf32, #tpu.memory_space<vmem>>, vector<16x384xf32>,
    return
  }
  func.func @transform_0(%arg0: i32) -> (i32, i32) {
    %c0_i32 = arith.constant 0 : i32
    %c0_i32_0 = arith.constant 0 : i32
    return %arg0, %c0_i32 : i32, i32
  }
  func.func @transform_1(%arg0: i32) -> (i32, i32) {
    %c0_i32 = arith.constant 0 : i32
    %c0_i32_0 = arith.constant 0 : i32
    %c0_i32_1 = arith.constant 0 : i32
    return %c0_i32, %c0_i32_0 : i32, i32
  }
  func.func @transform_2(%arg0: i32) -> (i32, i32) {
    %c0_i32 = arith.constant 0 : i32
    %c0_i32_0 = arith.constant 0 : i32
    %c0_i32_1 = arith.constant 0 : i32
    return %c0_i32, %c0_i32_0 : i32, i32
  }
  func.func @transform_3(%arg0: i32) -> (i32, i32) {
    %c0_i32 = arith.constant 0 : i32
    %c0_i32_0 = arith.constant 0 : i32
    %c0_i32_1 = arith.constant 0 : i32
    return %c0_i32, %c0_i32_0 : i32, i32
  }
  func.func @transform_4(%arg0: i32) -> (i32, i32) {
    %c0_i32 = arith.constant 0 : i32
    %c0_i32_0 = arith.constant 0 : i32
    %c0_i32_1 = arith.constant 0 : i32
    return %c0_i32, %c0_i32_0 : i32, i32
  }
  func.func @transform_5(%arg0: i32) -> (i32, i32) {
    %c0_i32 = arith.constant 0 : i32
    %c0_i32_0 = arith.constant 0 : i32
    return %arg0, %c0_i32 : i32, i32
  }
}

</mosaic_0001>

<bundles_post_ra>
// kernel: tpu_custom_call.1
= control target key start
LH: loop header
LB: loop body
LE: loop exit
PB: predicated region body
PF: predicated region fallthrough
CT: control target
= control target key end

     0   :  { %10 = vsyncpa [#allocation3], 0  ;;  %s834_s0 = inlined_call_operand.hbm [shape: f32[16,128], index: 0, kind: input, shape index: {}]   ;;  %s835_s1 = inlined_call_operand.hbm [shape: f32[128,384], index: 1, kind: input, shape index: {}]   ;;  %s836_s2 = inlined_call_operand.hbm [shape: f32[1,384], index: 2, kind: input, shape index: {}]   ;;  %s837_s3 = inlined_call_operand.hbm [shape: f32[384,384], index: 3, kind: input, shape index: {}]   ;;  %s838_s4 = inlined_call_operand.vmem [shape: f32[1,384], index: 4, kind: input, shape index: {}]   ;;  %s839_s5 = inlined_call_operand.hbm [shape: f32[16,384], index: 5, kind: output, shape index: {}]  }
   0x1   :  { %11 = vsyncpa [#allocation6], 0 }
   0x2   :  { %12 = vsyncpa [#allocation9], 0  ;;  %s31_s20 = sshll.u32 %s835_s1, 4  ;;  %s32_s20 = int_to_ptr.hbm [resolvable:$true] %s31_s20 }
   0x3   :  { %13 = vsyncpa [#allocation4], 0  ;;  %s768_s21 = smov [#allocation5]   ;;  %s18_s25 = sshll.u32 %s834_s0, 4  ;;  %s19_s25 = int_to_ptr.hbm [resolvable:$true] %s18_s25 }
   0x4   :  { %s33_s22 = sshll.u32 %s768_s21, 4  ;;  %s769_s26 = smov 384   ;;  %s34_s22 = int_to_ptr.vmem [resolvable:$true] %s33_s22 }
   0x5   :  { %s770_s27 = smov 24   ;;  %s771_s28 = smov [#allocation2]  }
   0x6   :  { %39 = dma.hbm_to_vmem [thread:$0]  %s32_s20, 6144, %s34_s22, [#allocation6], %s769_s26, %s769_s26, %s770_s27  }
   0x7   :  { %s20_s29 = sshll.u32 %s771_s28, 4  ;;  %s772_s1 = smov 128   ;;  %s21_s29 = int_to_ptr.vmem [resolvable:$true] %s20_s29 }
   0x8   :  { %s773_s30 = smov 8   ;;  %s45_s8 = sshll.u32 %s836_s2, 4  ;;  %s46_s8 = int_to_ptr.hbm [resolvable:$true] %s45_s8 }
   0x9   :  { %26 = dma.hbm_to_vmem [thread:$0]  %s19_s25, 256, %s21_s29, [#allocation3], %s772_s1, %s772_s1, %s773_s30  }
   0xa   :  { %s774_s9 = smov [#allocation7]   ;;  %s55_s12 = sshll.u32 %s837_s3, 4  ;;  %s56_s12 = int_to_ptr.hbm [resolvable:$true] %s55_s12 }
   0xb   :  { %s47_s0 = sshll.u32 %s774_s9, 4  ;;  %s775_s13 = smov [#allocation8]   ;;  %s48_s0 = int_to_ptr.vmem [resolvable:$true] %s47_s0 }
   0xc   :  { %50 = dma.hbm_to_vmem [thread:$0]  %s46_s8, 48, %s48_s0, [#allocation6]  }
   0xd   :  { %s57_s14 = sshll.u32 %s775_s13, 4  ;;  %s58_s14 = int_to_ptr.vmem [resolvable:$true] %s57_s14 }
   0xe   :  { %63 = dma.hbm_to_vmem [thread:$0]  %s56_s12, 18432, %s58_s14, [#allocation9], %s769_s26, %s769_s26, %s770_s27  }
   0xf   :  { %760 = dma.done.wait [#allocation3], 256  }
  0x10   :  { %761 = vsyncadd [#allocation3], 4294967040 }
  0x11   :  { %762 = dma.done.wait [#allocation6], 6192  }
  0x12   :  { %763 = vsyncadd [#allocation6], 4294961104 }
  0x13   :  { %764 = dma.done.wait [#allocation9], 18432  }
  0x14   :  { %765 = vsyncadd [#allocation9], 4294948864  ;;  %v129_v0 = vld [vmem:[#allocation5 + $0x168] sm:$0xff]  ;;  %v131_v1 = vld [vmem:[#allocation5 + $0x178] sm:$0xff]  ;;  %s592_s18 = sshll.u32 %s839_s5, 4  ;;  %s593_s18 = int_to_ptr.hbm [resolvable:$true] %s592_s18 }
  0x15   :  { %v126_v2 = vld [vmem:[#allocation5 + $0x150] sm:$0xff]  ;;  %140 = vmatpush.msra.mxu0 %v129_v0  ;;  %186 = vmatpush.msra.mxu2 %v131_v1  ;;  %v128_v4 = vld [vmem:[#allocation5 + $0x160] sm:$0xff]  ;;  %v123_v5 = vld [vmem:[#allocation5 + $0x138] sm:$0xff] }
  0x16   :  { %v130_v3 = vld [vmem:[#allocation5 + $0x170] sm:$0xff]  ;;  %v127_v6 = vld [vmem:[#allocation5 + $0x158] sm:$0xff]  ;;  %v125_v7 = vld [vmem:[#allocation5 + $0x148] sm:$0xff] }
  0x17   :  { %163 = vmatpush.msra.mxu1 %v130_v3  ;;  %141 = vmatpush.msra.mxu0 %v126_v2  ;;  %v124_v8 = vld [vmem:[#allocation5 + $0x140] sm:$0xff]  ;;  %v122_v10 = vld [vmem:[#allocation5 + $0x130] sm:$0xff]  ;;  %v121_v11 = vld [vmem:[#allocation5 + $0x128] sm:$0xff] }
  0x18   :  { %187 = vmatpush.msra.mxu2 %v128_v4  ;;  %v120_v9 = vld [vmem:[#allocation5 + $0x120] sm:$0xff]  ;;  %v117_v12 = vld [vmem:[#allocation5 + $0x108] sm:$0xff]  ;;  %v119_v13 = vld [vmem:[#allocation5 + $0x118] sm:$0xff] }
  0x19   :  { %164 = vmatpush.msra.mxu1 %v127_v6  ;;  %142 = vmatpush.msra.mxu0 %v123_v5  ;;  %v118_v14 = vld [vmem:[#allocation5 + $0x110] sm:$0xff]  ;;  %v116_v16 = vld [vmem:[#allocation5 + $0x100] sm:$0xff]  ;;  %v115_v17 = vld [vmem:[#allocation5 + $0xf8] sm:$0xff] }
  0x1a   :  { %188 = vmatpush.msra.mxu2 %v125_v7  ;;  %v114_v15 = vld [vmem:[#allocation5 + $0xf0] sm:$0xff]  ;;  %v111_v18 = vld [vmem:[#allocation5 + $0xd8] sm:$0xff]  ;;  %v113_v19 = vld [vmem:[#allocation5 + $0xe8] sm:$0xff] }
  0x1b   :  { %165 = vmatpush.msra.mxu1 %v124_v8  ;;  %143 = vmatpush.msra.mxu0 %v120_v9  ;;  %v112_v20 = vld [vmem:[#allocation5 + $0xe0] sm:$0xff]  ;;  %v110_v22 = vld [vmem:[#allocation5 + $0xd0] sm:$0xff]  ;;  %v109_v23 = vld [vmem:[#allocation5 + $0xc8] sm:$0xff] }
  0x1c   :  { %189 = vmatpush.msra.mxu2 %v122_v10  ;;  %v108_v21 = vld [vmem:[#allocation5 + $0xc0] sm:$0xff]  ;;  %v105_v24 = vld [vmem:[#allocation5 + $0xa8] sm:$0xff]  ;;  %v107_v25 = vld [vmem:[#allocation5 + $0xb8] sm:$0xff] }
  0x1d   :  { %166 = vmatpush.msra.mxu1 %v121_v11  ;;  %144 = vmatpush.msra.mxu0 %v117_v12  ;;  %v106_v26 = vld [vmem:[#allocation5 + $0xb0] sm:$0xff]  ;;  %v104_v28 = vld [vmem:[#allocation5 + $0xa0] sm:$0xff]  ;;  %v103_v30 = vld [vmem:[#allocation5 + $0x98] sm:$0xff] }
  0x1e   :  { %190 = vmatpush.msra.mxu2 %v119_v13  ;;  %v102_v27 = vld [vmem:[#allocation5 + $0x90] sm:$0xff]  ;;  %v99_v32 = vld [vmem:[#allocation5 + $0x78] sm:$0xff]  ;;  %v101_v33 = vld [vmem:[#allocation5 + $0x88] sm:$0xff] }
  0x1f   :  { %167 = vmatpush.msra.mxu1 %v118_v14  ;;  %145 = vmatpush.msra.mxu0 %v114_v15  ;;  %v260_v29 = vld [vmem:[#allocation8 + $0x168] sm:$0xff]  ;;  %v257_v31 = vld [vmem:[#allocation8 + $0x150] sm:$0xff]  ;;  %v100_v34 = vld [vmem:[#allocation5 + $0x80] sm:$0xff] }
  0x20   :  { %191 = vmatpush.msra.mxu2 %v116_v16  ;;  %367 = vmatpush.msra.mxu3 %v260_v29  ;;  %v254_v35 = vld [vmem:[#allocation8 + $0x138] sm:$0xff]  ;;  %v98_v37 = vld [vmem:[#allocation5 + $0x70] sm:$0xff]  ;;  %v97_v38 = vld [vmem:[#allocation5 + $0x68] sm:$0xff] }
  0x21   :  { %168 = vmatpush.msra.mxu1 %v115_v17  ;;  %146 = vmatpush.msra.mxu0 %v111_v18  ;;  %v96_v36 = vld [vmem:[#allocation5 + $0x60] sm:$0xff]  ;;  %v93_v40 = vld [vmem:[#allocation5 + $0x48] sm:$0xff]  ;;  %v95_v41 = vld [vmem:[#allocation5 + $0x58] sm:$0xff] }
  0x22   :  { %192 = vmatpush.msra.mxu2 %v113_v19  ;;  %368 = vmatpush.msra.mxu3 %v257_v31  ;;  %v251_v39 = vld [vmem:[#allocation8 + $0x120] sm:$0xff]  ;;  %v94_v42 = vld [vmem:[#allocation5 + $0x50] sm:$0xff]  ;;  %v91_v46 = vld [vmem:[#allocation5 + $0x38] sm:$0xff] }
  0x23   :  { %169 = vmatpush.msra.mxu1 %v112_v20  ;;  %147 = vmatpush.msra.mxu0 %v108_v21  ;;  %v248_v43 = vld [vmem:[#allocation8 + $0x108] sm:$0xff]  ;;  %v92_v45 = vld [vmem:[#allocation5 + $0x40] sm:$0xff]  ;;  %v245_v47 = vld [vmem:[#allocation8 + $0xf0] sm:$0xff] }
  0x24   :  { %193 = vmatpush.msra.mxu2 %v110_v22  ;;  %369 = vmatpush.msra.mxu3 %v254_v35  ;;  %v90_v44 = vld [vmem:[#allocation5 + $0x30] sm:$0xff]  ;;  %v87_v48 = vld [vmem:[#allocation5 + $0x18] sm:$0xff]  ;;  %v89_v49 = vld [vmem:[#allocation5 + $0x28] sm:$0xff] }
  0x25   :  { %170 = vmatpush.msra.mxu1 %v109_v23  ;;  %148 = vmatpush.msra.mxu0 %v105_v24  ;;  %v88_v50 = vld [vmem:[#allocation5 + $0x20] sm:$0xff]  ;;  %v86_v53 = vld [vmem:[#allocation5 + $0x10] sm:$0xff]  ;;  %v85_v55 = vld [vmem:[#allocation5 + $0x8] sm:$0xff] }
  0x26   :  { %194 = vmatpush.msra.mxu2 %v107_v25  ;;  %370 = vmatpush.msra.mxu3 %v251_v39  ;;  %v242_v51 = vld [vmem:[#allocation8 + $0xd8] sm:$0xff]  ;;  %v82_v54 = vld [vmem:[#allocation2] sm:$0xff]  ;;  %v239_v56 = vld [vmem:[#allocation8 + $0xc0] sm:$0xff] }
  0x27   :  { %171 = vmatpush.msra.mxu1 %v106_v26  ;;  %149 = vmatpush.msra.mxu0 %v102_v27  ;;  %v84_v52 = vld [vmem:[#allocation5] sm:$0xff]  ;;  %v261_v57 = vld [vmem:[#allocation8 + $0x170] sm:$0xff]  ;;  %v236_v58 = vld [vmem:[#allocation8 + $0xa8] sm:$0xff] }
  0x28   :  { %195 = vmatpush.msra.mxu2 %v104_v28  ;;  %371 = vmatpush.msra.mxu3 %v248_v43  ;;  %v308_v59 = vld [vmem:[#allocation8 + $0x2e8] sm:$0xff]  ;;  %v258_v60 = vld [vmem:[#allocation8 + $0x158] sm:$0xff]  ;;  %v233_v62 = vld [vmem:[#allocation8 + $0x90] sm:$0xff] }
  0x29   :  { %172 = vmatpush.msra.mxu1 %v103_v30  ;;  %150 = vmatpush.msra.mxu0 %v99_v32  ;;  %v356_v61 = vld [vmem:[#allocation8 + $0x468] sm:$0xff]  ;;  %v305_v63 = vld [vmem:[#allocation8 + $0x2d0] sm:$0xff]  ;;  %v255_v0 = vld [vmem:[#allocation8 + $0x140] sm:$0xff] }
  0x2a   :  { %196 = vmatpush.msra.mxu2 %v101_v33  ;;  %372 = vmatpush.msra.mxu3 %v245_v47  ;;  %v353_v1 = vld [vmem:[#allocation8 + $0x450] sm:$0xff]  ;;  %v230_v2 = vld [vmem:[#allocation8 + $0x78] sm:$0xff]  ;;  %v252_v5 = vld [vmem:[#allocation8 + $0x128] sm:$0xff] }
  0x2b   :  { %173 = vmatpush.msra.mxu1 %v100_v34  ;;  %151 = vmatpush.msra.mxu0 %v96_v36  ;;  %v302_v3 = vld [vmem:[#allocation8 + $0x2b8] sm:$0xff]  ;;  %v227_v6 = vld [vmem:[#allocation8 + $0x60] sm:$0xff]  ;;  %v249_v8 = vld [vmem:[#allocation8 + $0x110] sm:$0xff] }
  0x2c   :  { %197 = vmatpush.msra.mxu2 %v98_v37  ;;  %373 = vmatpush.msra.mxu3 %v242_v51  ;;  %v83_v4 = vld [vmem:[#allocation2 + $0x8] sm:$0xff]  ;;  %v299_v7 = vld [vmem:[#allocation8 + $0x2a0] sm:$0xff]  ;;  %v224_v9 = vld [vmem:[#allocation8 + $0x48] sm:$0xff] }
  0x2d   :  { %174 = vmatpush.msra.mxu1 %v97_v38  ;;  %152 = vmatpush.msra.mxu0 %v93_v40  ;;  %v296_v10 = vld [vmem:[#allocation8 + $0x288] sm:$0xff]  ;;  %v350_v11 = vld [vmem:[#allocation8 + $0x438] sm:$0xff]  ;;  %v221_v13 = vld [vmem:[#allocation8 + $0x30] sm:$0xff] }
  0x2e   :  { %198 = vmatpush.msra.mxu2 %v95_v41  ;;  %374 = vmatpush.msra.mxu3 %v239_v56  ;;  %v246_v12 = vld [vmem:[#allocation8 + $0xf8] sm:$0xff]  ;;  %v293_v14 = vld [vmem:[#allocation8 + $0x270] sm:$0xff]  ;;  %v347_v15 = vld [vmem:[#allocation8 + $0x420] sm:$0xff] }
  0x2f   :  { %175 = vmatpush.msra.mxu1 %v94_v42  ;;  %153 = vmatpush.msra.mxu0 %v90_v44  ;;  %v243_v16 = vld [vmem:[#allocation8 + $0xe0] sm:$0xff]  ;;  %v218_v17 = vld [vmem:[#allocation8 + $0x18] sm:$0xff]  ;;  %v344_v19 = vld [vmem:[#allocation8 + $0x408] sm:$0xff] }
  0x30   :  { %199 = vmatpush.msra.mxu2 %v92_v45  ;;  %375 = vmatpush.msra.mxu3 %v236_v58  ;;  %v290_v18 = vld [vmem:[#allocation8 + $0x258] sm:$0xff]  ;;  %v240_v20 = vld [vmem:[#allocation8 + $0xc8] sm:$0xff]  ;;  %v215_v21 = vld [vmem:[#allocation8] sm:$0xff] }
  0x31   :  { %176 = vmatpush.msra.mxu1 %v91_v46  ;;  %154 = vmatpush.msra.mxu0 %v87_v48  ;;  %v287_v22 = vld [vmem:[#allocation8 + $0x240] sm:$0xff]  ;;  %v341_v23 = vld [vmem:[#allocation8 + $0x3f0] sm:$0xff]  ;;  %v284_v26 = vld [vmem:[#allocation8 + $0x228] sm:$0xff] }
  0x32   :  { %200 = vmatpush.msra.mxu2 %v89_v49  ;;  %376 = vmatpush.msra.mxu3 %v233_v62  ;;  %v237_v24 = vld [vmem:[#allocation8 + $0xb0] sm:$0xff]  ;;  %v338_v27 = vld [vmem:[#allocation8 + $0x3d8] sm:$0xff]  ;;  %v335_v31 = vld [vmem:[#allocation8 + $0x3c0] sm:$0xff] }
  0x33   :  { %177 = vmatpush.msra.mxu1 %v88_v50  ;;  %155 = vmatpush.msra.mxu0 %v84_v52  ;;  %v309_v25 = vld [vmem:[#allocation8 + $0x2f0] sm:$0xff]  ;;  %v234_v28 = vld [vmem:[#allocation8 + $0x98] sm:$0xff]  ;;  %v231_v32 = vld [vmem:[#allocation8 + $0x80] sm:$0xff] }
  0x34   :  { %201 = vmatpush.msra.mxu2 %v86_v53  ;;  %156 = vmatmul.f32.vlgmr.msra.gmra.mxu0 %v82_v54  ;;  %v306_v29 = vld [vmem:[#allocation8 + $0x2d8] sm:$0xff]  ;;  %v281_v30 = vld [vmem:[#allocation8 + $0x210] sm:$0xff]  ;;  %v303_v33 = vld [vmem:[#allocation8 + $0x2c0] sm:$0xff] }
  0x35   :  { %202 = vmatmul.f32.vlgmr.msra.gmra.mxu2 %v82_v54  ;;  %178 = vmatpush.msra.mxu1 %v85_v55  ;;  %v278_v34 = vld [vmem:[#allocation8 + $0x1f8] sm:$0xff]  ;;  %v332_v35 = vld [vmem:[#allocation8 + $0x3a8] sm:$0xff]  ;;  %v275_v38 = vld [vmem:[#allocation8 + $0x1e0] sm:$0xff] }
  0x36   :  { %179 = vmatmul.f32.vlgmr.msra.gmra.mxu1 %v82_v54  ;;  %436 = vmatpush.msrb.mxu2 %v261_v57  ;;  %v228_v36 = vld [vmem:[#allocation8 + $0x68] sm:$0xff]  ;;  %v329_v39 = vld [vmem:[#allocation8 + $0x390] sm:$0xff]  ;;  %v326_v43 = vld [vmem:[#allocation8 + $0x378] sm:$0xff] }
  0x37   :  { %390 = vmatpush.msrb.mxu0 %v308_v59  ;;  %413 = vmatpush.msrb.mxu1 %v356_v61  ;;  %v300_v37 = vld [vmem:[#allocation8 + $0x2a8] sm:$0xff]  ;;  %v225_v40 = vld [vmem:[#allocation8 + $0x50] sm:$0xff]  ;;  %v222_v44 = vld [vmem:[#allocation8 + $0x38] sm:$0xff] }
  0x38   :  { %437 = vmatpush.msrb.mxu2 %v258_v60  ;;  %377 = vmatpush.msra.mxu3 %v230_v2  ;;  %v297_v41 = vld [vmem:[#allocation8 + $0x290] sm:$0xff]  ;;  %v272_v42 = vld [vmem:[#allocation8 + $0x1c8] sm:$0xff]  ;;  %v294_v45 = vld [vmem:[#allocation8 + $0x278] sm:$0xff] }
  0x39   :  { %391 = vmatpush.msrb.mxu0 %v305_v63  ;;  %414 = vmatpush.msrb.mxu1 %v353_v1  ;;  %v269_v46 = vld [vmem:[#allocation8 + $0x1b0] sm:$0xff]  ;;  %v323_v47 = vld [vmem:[#allocation8 + $0x360] sm:$0xff]  ;;  %v266_v50 = vld [vmem:[#allocation8 + $0x198] sm:$0xff] }
  0x3a   :  { %438 = vmatpush.msrb.mxu2 %v255_v0  ;;  %378 = vmatpush.msra.mxu3 %v227_v6  ;;  %v219_v48 = vld [vmem:[#allocation8 + $0x20] sm:$0xff]  ;;  %v320_v51 = vld [vmem:[#allocation8 + $0x348] sm:$0xff]  ;;  %v310_v54 = vld [vmem:[#allocation8 + $0x2f8] sm:$0xff] }
  0x3b   :  { %392 = vmatpush.msrb.mxu0 %v302_v3  ;;  %415 = vmatpush.msrb.mxu1 %v350_v11  ;;  %v291_v49 = vld [vmem:[#allocation8 + $0x260] sm:$0xff]  ;;  %v216_v52 = vld [vmem:[#allocation8 + $0x8] sm:$0xff]  ;;  %v317_v56 = vld [vmem:[#allocation8 + $0x330] sm:$0xff] }
  0x3c   :  { %159 = vmatmul.f32.gmra.mxu0 %v83_v4  ;;  %439 = vmatpush.msrb.mxu2 %v252_v5  ;;  %v288_v53 = vld [vmem:[#allocation8 + $0x248] sm:$0xff]  ;;  %v263_v55 = vld [vmem:[#allocation8 + $0x180] sm:$0xff]  ;;  %v285_v57 = vld [vmem:[#allocation8 + $0x230] sm:$0xff] }
  0x3d   :  { %205 = vmatmul.f32.gmra.mxu2 %v83_v4  ;;  %393 = vmatpush.msrb.mxu0 %v299_v7  ;;  %v357_v58 = vld [vmem:[#allocation8 + $0x470] sm:$0xff]  ;;  %v307_v59 = vld [vmem:[#allocation8 + $0x2e0] sm:$0xff]  ;;  %v314_v60 = vld [vmem:[#allocation8 + $0x318] sm:$0xff] }
  0x3e   :  { %182 = vmatmul.f32.gmra.mxu1 %v83_v4  ;;  %440 = vmatpush.msrb.mxu2 %v249_v8  ;;  %v282_v61 = vld [vmem:[#allocation8 + $0x218] sm:$0xff]  ;;  %v304_v63 = vld [vmem:[#allocation8 + $0x2c8] sm:$0xff]  ;;  %v311_v0 = vld [vmem:[#allocation8 + $0x300] sm:$0xff] }
  0x3f   :  { %379 = vmatpush.msra.mxu3 %v224_v9  ;;  %394 = vmatpush.msrb.mxu0 %v296_v10  ;;  %v354_v62 = vld [vmem:[#allocation8 + $0x458] sm:$0xff]  ;;  %v279_v1 = vld [vmem:[#allocation8 + $0x200] sm:$0xff]  ;;  %v301_v4 = vld [vmem:[#allocation8 + $0x2b0] sm:$0xff] }
  0x40   :  { %441 = vmatpush.msrb.mxu2 %v246_v12  ;;  %416 = vmatpush.msrb.mxu1 %v347_v15  ;;  %v351_v2 = vld [vmem:[#allocation8 + $0x440] sm:$0xff]  ;;  %v262_v3 = vld [vmem:[#allocation8 + $0x178] sm:$0xff]  ;;  %v276_v5 = vld [vmem:[#allocation8 + $0x1e8] sm:$0xff] }
  0x41   :  { %380 = vmatpush.msra.mxu3 %v221_v13  ;;  %395 = vmatpush.msrb.mxu0 %v293_v14  ;;  %v348_v6 = vld [vmem:[#allocation8 + $0x428] sm:$0xff]  ;;  %v259_v7 = vld [vmem:[#allocation8 + $0x160] sm:$0xff]  ;;  %v298_v8 = vld [vmem:[#allocation8 + $0x298] sm:$0xff] }
  0x42   :  { %442 = vmatpush.msrb.mxu2 %v243_v16  ;;  %417 = vmatpush.msrb.mxu1 %v344_v19  ;;  %v273_v9 = vld [vmem:[#allocation8 + $0x1d0] sm:$0xff]  ;;  %v256_v11 = vld [vmem:[#allocation8 + $0x148] sm:$0xff]  ;;  %v295_v12 = vld [vmem:[#allocation8 + $0x280] sm:$0xff] }
  0x43   :  { %381 = vmatpush.msra.mxu3 %v218_v17  ;;  %396 = vmatpush.msrb.mxu0 %v290_v18  ;;  %v345_v10 = vld [vmem:[#allocation8 + $0x410] sm:$0xff]  ;;  %v270_v13 = vld [vmem:[#allocation8 + $0x1b8] sm:$0xff]  ;;  %v292_v16 = vld [vmem:[#allocation8 + $0x268] sm:$0xff] }
  0x44   :  { %443 = vmatpush.msrb.mxu2 %v240_v20  ;;  %418 = vmatpush.msrb.mxu1 %v341_v23  ;;  %v342_v14 = vld [vmem:[#allocation8 + $0x3f8] sm:$0xff]  ;;  %v253_v15 = vld [vmem:[#allocation8 + $0x130] sm:$0xff]  ;;  %v267_v17 = vld [vmem:[#allocation8 + $0x1a0] sm:$0xff] }
  0x45   :  { %382 = vmatpush.msra.mxu3 %v215_v21  ;;  %397 = vmatpush.msrb.mxu0 %v287_v22  ;;  %v339_v18 = vld [vmem:[#allocation8 + $0x3e0] sm:$0xff]  ;;  %v250_v19 = vld [vmem:[#allocation8 + $0x118] sm:$0xff]  ;;  %v289_v20 = vld [vmem:[#allocation8 + $0x250] sm:$0xff] }
  0x46   :  { %444 = vmatpush.msrb.mxu2 %v237_v24  ;;  %419 = vmatpush.msrb.mxu1 %v338_v27  ;;  %v264_v21 = vld [vmem:[#allocation8 + $0x188] sm:$0xff]  ;;  %v247_v23 = vld [vmem:[#allocation8 + $0x100] sm:$0xff]  ;;  %v286_v24 = vld [vmem:[#allocation8 + $0x238] sm:$0xff] }
  0x47   :  { %459 = vmatpush.msrb.mxu3 %v309_v25  ;;  %398 = vmatpush.msrb.mxu0 %v284_v26  ;;  %v336_v22 = vld [vmem:[#allocation8 + $0x3c8] sm:$0xff]  ;;  %v333_v25 = vld [vmem:[#allocation8 + $0x3b0] sm:$0xff]  ;;  %v283_v27 = vld [vmem:[#allocation8 + $0x220] sm:$0xff] }
  0x48   :  { %445 = vmatpush.msrb.mxu2 %v234_v28  ;;  %420 = vmatpush.msrb.mxu1 %v335_v31  ;;  %v244_v26 = vld [vmem:[#allocation8 + $0xe8] sm:$0xff]  ;;  %v330_v28 = vld [vmem:[#allocation8 + $0x398] sm:$0xff]  ;;  %v327_v31 = vld [vmem:[#allocation8 + $0x380] sm:$0xff] }
  0x49   :  { %460 = vmatpush.msrb.mxu3 %v306_v29  ;;  %399 = vmatpush.msrb.mxu0 %v281_v30  ;;  %v241_v29 = vld [vmem:[#allocation8 + $0xd0] sm:$0xff]  ;;  %v280_v30 = vld [vmem:[#allocation8 + $0x208] sm:$0xff] }
  0x4a   :  { %446 = vmatpush.msrb.mxu2 %v231_v32  ;;  %421 = vmatpush.msrb.mxu1 %v332_v35  ;;  %v238_v32 = vld [vmem:[#allocation8 + $0xb8] sm:$0xff]  ;;  %v235_v35 = vld [vmem:[#allocation8 + $0xa0] sm:$0xff] }
  0x4b   :  { %461 = vmatpush.msrb.mxu3 %v303_v33  ;;  %400 = vmatpush.msrb.mxu0 %v278_v34  ;;  %v277_v33 = vld [vmem:[#allocation8 + $0x1f0] sm:$0xff]  ;;  %v324_v34 = vld [vmem:[#allocation8 + $0x368] sm:$0xff] }
  0x4c   :  { %447 = vmatpush.msrb.mxu2 %v228_v36  ;;  %422 = vmatpush.msrb.mxu1 %v329_v39  ;;  %v274_v36 = vld [vmem:[#allocation8 + $0x1d8] sm:$0xff]  ;;  %v271_v39 = vld [vmem:[#allocation8 + $0x1c0] sm:$0xff] }
  0x4d   :  { %462 = vmatpush.msrb.mxu3 %v300_v37  ;;  %401 = vmatpush.msrb.mxu0 %v275_v38  ;;  %v321_v37 = vld [vmem:[#allocation8 + $0x350] sm:$0xff]  ;;  %v232_v38 = vld [vmem:[#allocation8 + $0x88] sm:$0xff] }
  0x4e   :  { %448 = vmatpush.msrb.mxu2 %v225_v40  ;;  %423 = vmatpush.msrb.mxu1 %v326_v43  ;;  %v318_v40 = vld [vmem:[#allocation8 + $0x338] sm:$0xff]  ;;  %v315_v43 = vld [vmem:[#allocation8 + $0x320] sm:$0xff] }
  0x4f   :  { %463 = vmatpush.msrb.mxu3 %v297_v41  ;;  %402 = vmatpush.msrb.mxu0 %v272_v42  ;;  %v229_v41 = vld [vmem:[#allocation8 + $0x70] sm:$0xff]  ;;  %v268_v42 = vld [vmem:[#allocation8 + $0x1a8] sm:$0xff] }
  0x50   :  { %449 = vmatpush.msrb.mxu2 %v222_v44  ;;  %424 = vmatpush.msrb.mxu1 %v323_v47  ;;  %v226_v44 = vld [vmem:[#allocation8 + $0x58] sm:$0xff]  ;;  %v312_v47 = vld [vmem:[#allocation8 + $0x308] sm:$0xff] }
  0x51   :  { %464 = vmatpush.msrb.mxu3 %v294_v45  ;;  %403 = vmatpush.msrb.mxu0 %v269_v46  ;;  %v265_v45 = vld [vmem:[#allocation8 + $0x190] sm:$0xff]  ;;  %v132_v46 = vld [vmem:[#allocation7] sm:$0x7] }
  0x52   :  { %450 = vmatpush.msrb.mxu2 %v219_v48  ;;  %425 = vmatpush.msrb.mxu1 %v320_v51  ;;  %v223_v48 = vld [vmem:[#allocation8 + $0x40] sm:$0xff]  ;;  %v217_v51 = vld [vmem:[#allocation8 + $0x10] sm:$0xff] }
  0x53   :  { %465 = vmatpush.msrb.mxu3 %v291_v49  ;;  %404 = vmatpush.msrb.mxu0 %v266_v50  ;;  %v220_v49 = vld [vmem:[#allocation8 + $0x28] sm:$0xff]  ;;  %v134_v50 = vperm.slane %v132_v46, 0 }
  0x54   :  { %451 = vmatpush.msrb.mxu2 %v216_v52  ;;  %426 = vmatpush.msrb.mxu1 %v317_v56  ;;  %v135_v52 = vperm.slane %v132_v46, 1 }
  0x55   :  { %466 = vmatpush.msrb.mxu3 %v288_v53  ;;  %405 = vmatpush.msrb.mxu0 %v263_v55 }
  0x56   :  { %528 = vmatpush.msra.mxu2 %v310_v54  ;;  %427 = vmatpush.msrb.mxu1 %v314_v60 }
  0x57   :  { %467 = vmatpush.msrb.mxu3 %v285_v57  ;;  %482 = vmatpush.msra.mxu0 %v357_v58  ;;  %v136_v57 = vperm.slane %v132_v46, 2 }
  0x58   :  { %529 = vmatpush.msra.mxu2 %v307_v59  ;;  %428 = vmatpush.msrb.mxu1 %v311_v0 }
  0x59   :  { %468 = vmatpush.msrb.mxu3 %v282_v61  ;;  %483 = vmatpush.msra.mxu0 %v354_v62  ;;  %v358_v61 = vld [vmem:[#allocation8 + $0x478] sm:$0xff] }
  0x5a   :  { %530 = vmatpush.msra.mxu2 %v304_v63  ;;  %505 = vmatpush.msra.mxu1 %v262_v3 }
  0x5b   :  { %469 = vmatpush.msrb.mxu3 %v279_v1  ;;  %484 = vmatpush.msra.mxu0 %v351_v2  ;;  %v355_v1 = vld [vmem:[#allocation8 + $0x460] sm:$0xff] }
  0x5c   :  { %531 = vmatpush.msra.mxu2 %v301_v4  ;;  %506 = vmatpush.msra.mxu1 %v259_v7  ;;  %v352_v4 = vld [vmem:[#allocation8 + $0x448] sm:$0xff] }
  0x5d   :  { %470 = vmatpush.msrb.mxu3 %v276_v5  ;;  %485 = vmatpush.msra.mxu0 %v348_v6  ;;  %v349_v6 = vld [vmem:[#allocation8 + $0x430] sm:$0xff] }
  0x5e   :  { %532 = vmatpush.msra.mxu2 %v298_v8  ;;  %507 = vmatpush.msra.mxu1 %v256_v11  ;;  %v343_v11 = vld [vmem:[#allocation8 + $0x400] sm:$0xff] }
  0x5f   :  { %471 = vmatpush.msrb.mxu3 %v273_v9  ;;  %486 = vmatpush.msra.mxu0 %v345_v10  ;;  %v346_v9 = vld [vmem:[#allocation8 + $0x418] sm:$0xff] }
  0x60   :  { %533 = vmatpush.msra.mxu2 %v295_v12  ;;  %508 = vmatpush.msra.mxu1 %v253_v15 }
  0x61   :  { %472 = vmatpush.msrb.mxu3 %v270_v13  ;;  %487 = vmatpush.msra.mxu0 %v342_v14  ;;  %v340_v13 = vld [vmem:[#allocation8 + $0x3e8] sm:$0xff]  ;;  %v337_v14 = vld [vmem:[#allocation8 + $0x3d0] sm:$0xff] }
  0x62   :  { %534 = vmatpush.msra.mxu2 %v292_v16  ;;  %509 = vmatpush.msra.mxu1 %v250_v19  ;;  %v334_v16 = vld [vmem:[#allocation8 + $0x3b8] sm:$0xff]  ;;  %v325_v19 = vld [vmem:[#allocation8 + $0x370] sm:$0xff] }
  0x63   :  { %473 = vmatpush.msrb.mxu3 %v267_v17  ;;  %488 = vmatpush.msra.mxu0 %v339_v18  ;;  %v331_v17 = vld [vmem:[#allocation8 + $0x3a0] sm:$0xff]  ;;  %v328_v18 = vld [vmem:[#allocation8 + $0x388] sm:$0xff] }
  0x64   :  { %535 = vmatpush.msra.mxu2 %v289_v20  ;;  %510 = vmatpush.msra.mxu1 %v247_v23  ;;  %v322_v20 = vld [vmem:[#allocation8 + $0x358] sm:$0xff]  ;;  %v313_v23 = vld [vmem:[#allocation8 + $0x310] sm:$0xff] }
  0x65   :  { %474 = vmatpush.msrb.mxu3 %v264_v21  ;;  %489 = vmatpush.msra.mxu0 %v336_v22  ;;  %v319_v21 = vld [vmem:[#allocation8 + $0x340] sm:$0xff]  ;;  %v316_v22 = vld [vmem:[#allocation8 + $0x328] sm:$0xff] }
  0x66   :  { %536 = vmatpush.msra.mxu2 %v286_v24  ;;  %511 = vmatpush.msra.mxu1 %v244_v26  ;;  %v359_v24 = vld [vmem:[%s838_s4] sm:$0x7]  ;;  %s776_s4 = smov [#allocation10]  }
  0x67   :  { %490 = vmatpush.msra.mxu0 %v333_v25  ;;  %v361_v26 = vperm.slane %v359_v24, 0  ;;  %s590_s15 = sshll.u32 %s776_s4, 4  ;;  %s591_s15 = int_to_ptr.vmem [resolvable:$true] %s590_s15 }
  0x68   :  { %537 = vmatpush.msra.mxu2 %v283_v27  ;;  %512 = vmatpush.msra.mxu1 %v241_v29 }
  0x69   :  { %491 = vmatpush.msra.mxu0 %v330_v28 }
  0x6a   :  { %538 = vmatpush.msra.mxu2 %v280_v30  ;;  %513 = vmatpush.msra.mxu1 %v238_v32 }
  0x6b   :  { %492 = vmatpush.msra.mxu0 %v327_v31 }
  0x6c   :  { %539 = vmatpush.msra.mxu2 %v277_v33  ;;  %514 = vmatpush.msra.mxu1 %v235_v35 }
  0x6d   :  { %493 = vmatpush.msra.mxu0 %v324_v34 }
  0x6e   :  { %540 = vmatpush.msra.mxu2 %v274_v36  ;;  %515 = vmatpush.msra.mxu1 %v232_v38  ;;  %v362_v36 = vperm.slane %v359_v24, 1 }
  0x6f   :  { %494 = vmatpush.msra.mxu0 %v321_v37 }
  0x70   :  { %541 = vmatpush.msra.mxu2 %v271_v39  ;;  %516 = vmatpush.msra.mxu1 %v229_v41 }
  0x71   :  { %495 = vmatpush.msra.mxu0 %v318_v40 }
  0x72   :  { %542 = vmatpush.msra.mxu2 %v268_v42  ;;  %517 = vmatpush.msra.mxu1 %v226_v44 }
  0x73   :  { %496 = vmatpush.msra.mxu0 %v315_v43 }
  0x74   :  { %543 = vmatpush.msra.mxu2 %v265_v45  ;;  %518 = vmatpush.msra.mxu1 %v223_v48 }
  0x75   :  { %497 = vmatpush.msra.mxu0 %v312_v47 }
  0x76   :  { %519 = vmatpush.msra.mxu1 %v220_v49 }
  0x78   :  { %520 = vmatpush.msra.mxu1 %v217_v51 }
  0xb1   :  { %v157_v53 = vpop.f32.mrf.mxu0 }
  0xb2   :  { %v158_v54 = vadd.f32 %v157_v53, %v134_v50 }
  0xb3   :  { %v180_v55 = vpop.f32.mrf.mxu1 }
  0xb4   :  { %616 = vtanh.f32 %v158_v54  ;;  %v181_v56 = vadd.f32 %v180_v55, %v135_v52 }
  0xb6   :  { %618 = vtanh.f32 %v181_v56 }
  0xb8   :  { %v203_v58 = vpop.f32.mrf.mxu2 }
  0xb9   :  { %v204_v59 = vadd.f32 %v203_v58, %v136_v57  ;;  %v160_v60 = vpop.f32.mrf.mxu0 }
  0xba   :  { %v617_v62 = vpop.eup %616  ;;  %v161_v63 = vadd.f32 %v160_v60, %v134_v50  ;;  %v363_v50 = vperm.slane %v359_v24, 2 }
  0xbb   :  { %620 = vtanh.f32 %v204_v59  ;;  %v183_v0 = vpop.f32.mrf.mxu1  ;;  %383 = vmatmul.f32.vlgmr.msra.gmra.mxu3 %v617_v62  ;;  %452 = vmatmul.f32.vlgmr.msrb.gmra.mxu2 %v617_v62 }
  0xbc   :  { %v619_v2 = vpop.eup %618  ;;  %622 = vtanh.f32 %v161_v63  ;;  %v184_v3 = vadd.f32 %v183_v0, %v135_v52  ;;  %551 = vmatpush.msra.mxu3 %v358_v61 }
  0xbd   :  { %406 = vmatmul.f32.vlgmr.msrb.gmra.mxu0 %v619_v2 }
  0xbe   :  { %624 = vtanh.f32 %v184_v3  ;;  %552 = vmatpush.msra.mxu3 %v355_v1 }
  0xc0   :  { %v206_v5 = vpop.f32.mrf.mxu2  ;;  %553 = vmatpush.msra.mxu3 %v352_v4 }
  0xc1   :  { %v621_v7 = vpop.eup %620  ;;  %v207_v8 = vadd.f32 %v206_v5, %v136_v57 }
  0xc2   :  { %429 = vmatmul.f32.vlgmr.msrb.gmra.mxu1 %v621_v7  ;;  %v623_v10 = vpop.eup %622  ;;  %554 = vmatpush.msra.mxu3 %v349_v6 }
  0xc3   :  { %626 = vtanh.f32 %v207_v8  ;;  %386 = vmatmul.f32.gmra.mxu3 %v623_v10  ;;  %455 = vmatmul.f32.gmra.mxu2 %v623_v10 }
  0xc4   :  { %v625_v12 = vpop.eup %624  ;;  %555 = vmatpush.msra.mxu3 %v346_v9 }
  0xc5   :  { %409 = vmatmul.f32.gmra.mxu0 %v625_v12 }
  0xc6   :  { %556 = vmatpush.msra.mxu3 %v343_v11 }
  0xc8   :  { %557 = vmatpush.msra.mxu3 %v340_v13 }
  0xc9   :  { %v627_v15 = vpop.eup %626 }
  0xca   :  { %432 = vmatmul.f32.gmra.mxu1 %v627_v15  ;;  %558 = vmatpush.msra.mxu3 %v337_v14 }
  0xcb   :  { %475 = vmatmul.f32.vlgmr.msrb.gmra.mxu3 %v619_v2  ;;  %544 = vmatmul.f32.vlgmr.msra.gmra.mxu2 %v619_v2 }
  0xcc   :  { %559 = vmatpush.msra.mxu3 %v334_v16 }
  0xcd   :  { %498 = vmatmul.f32.vlgmr.msra.gmra.mxu0 %v621_v7 }
  0xce   :  { %560 = vmatpush.msra.mxu3 %v331_v17 }
  0xd0   :  { %561 = vmatpush.msra.mxu3 %v328_v18 }
  0xd2   :  { %521 = vmatmul.f32.vlgmr.msra.gmra.mxu1 %v617_v62  ;;  %562 = vmatpush.msra.mxu3 %v325_v19 }
  0xd3   :  { %478 = vmatmul.f32.gmra.mxu3 %v625_v12  ;;  %547 = vmatmul.f32.gmra.mxu2 %v625_v12 }
  0xd4   :  { %563 = vmatpush.msra.mxu3 %v322_v20 }
  0xd5   :  { %501 = vmatmul.f32.gmra.mxu0 %v627_v15 }
  0xd6   :  { %564 = vmatpush.msra.mxu3 %v319_v21 }
  0xd8   :  { %565 = vmatpush.msra.mxu3 %v316_v22 }
  0xda   :  { %524 = vmatmul.f32.gmra.mxu1 %v623_v10  ;;  %566 = vmatpush.msra.mxu3 %v313_v23 }
  0xdb   :  { %567 = vmatmul.f32.vlgmr.msra.gmra.mxu3 %v621_v7 }
  0xe3   :  { %570 = vmatmul.f32.gmra.mxu3 %v627_v15 }
 0x13a   :  { %v407_v25 = vpop.f32.mrf.mxu0 }
 0x13e   :  { %v384_v27 = vpop.f32.mrf.mxu3  ;;  %v453_v33 = vpop.f32.mrf.mxu2 }
 0x13f   :  { %v385_v28 = vadd.f32 %v384_v27, %v361_v26  ;;  %v430_v29 = vpop.f32.mrf.mxu1  ;;  %v454_v41 = vadd.f32 %v453_v33, %v362_v36 }
 0x141   :  { %v408_v30 = vadd.f32 %v407_v25, %v385_v28 }
 0x142   :  { %v410_v32 = vpop.f32.mrf.mxu0 }
 0x143   :  { %v431_v31 = vadd.f32 %v430_v29, %v408_v30 }
 0x145   :  { %628 = vtanh.f32 %v431_v31 }
 0x146   :  { %v387_v34 = vpop.f32.mrf.mxu3  ;;  %v456_v45 = vpop.f32.mrf.mxu2 }
 0x147   :  { %v388_v35 = vadd.f32 %v387_v34, %v361_v26  ;;  %v433_v38 = vpop.f32.mrf.mxu1  ;;  %v457_v49 = vadd.f32 %v456_v45, %v362_v36 }
 0x149   :  { %v411_v37 = vadd.f32 %v410_v32, %v388_v35 }
 0x14a   :  { %v499_v42 = vpop.f32.mrf.mxu0 }
 0x14b   :  { %v629_v39 = vpop.eup %628  ;;  %v434_v40 = vadd.f32 %v433_v38, %v411_v37 }
 0x14c   :  { %580 = vst [vmem:[#allocation10] sm:$0xff] %v629_v39 }
 0x14d   :  { %630 = vtanh.f32 %v434_v40 }
 0x14e   :  { %v476_v43 = vpop.f32.mrf.mxu3  ;;  %v545_v57 = vpop.f32.mrf.mxu2 }
 0x14f   :  { %v477_v44 = vadd.f32 %v476_v43, %v454_v41  ;;  %v522_v48 = vpop.f32.mrf.mxu1 }
 0x150   :  { %v523_v55 = vadd.f32 %v522_v48, %v363_v50 }
 0x151   :  { %v500_v46 = vadd.f32 %v499_v42, %v477_v44 }
 0x152   :  { %v502_v53 = vpop.f32.mrf.mxu0  ;;  %v546_v58 = vadd.f32 %v545_v57, %v523_v55 }
 0x153   :  { %v631_v47 = vpop.eup %630  ;;  %632 = vtanh.f32 %v500_v46 }
 0x154   :  { %583 = vst [vmem:[#allocation10 + $0x18] sm:$0xff] %v631_v47 }
 0x156   :  { %v479_v51 = vpop.f32.mrf.mxu3  ;;  %v548_v0 = vpop.f32.mrf.mxu2 }
 0x157   :  { %v480_v52 = vadd.f32 %v479_v51, %v457_v49  ;;  %v525_v59 = vpop.f32.mrf.mxu1 }
 0x158   :  { %v526_v63 = vadd.f32 %v525_v59, %v363_v50 }
 0x159   :  { %v633_v54 = vpop.eup %632  ;;  %v503_v56 = vadd.f32 %v502_v53, %v480_v52 }
 0x15a   :  { %581 = vst [vmem:[#allocation10 + $0x8] sm:$0xff] %v633_v54  ;;  %v549_v1 = vadd.f32 %v548_v0, %v526_v63 }
 0x15b   :  { %634 = vtanh.f32 %v503_v56 }
 0x15e   :  { %v568_v60 = vpop.f32.mrf.mxu3 }
 0x15f   :  { %v569_v61 = vadd.f32 %v568_v60, %v546_v58 }
 0x161   :  { %v635_v62 = vpop.eup %634  ;;  %636 = vtanh.f32 %v569_v61 }
 0x162   :  { %584 = vst [vmem:[#allocation10 + $0x20] sm:$0xff] %v635_v62 }
 0x166   :  { %v571_v2 = vpop.f32.mrf.mxu3 }
 0x167   :  { %v637_v3 = vpop.eup %636  ;;  %v572_v4 = vadd.f32 %v571_v2, %v549_v1 }
 0x168   :  { %582 = vst [vmem:[#allocation10 + $0x10] sm:$0xff] %v637_v3 }
 0x169   :  { %638 = vtanh.f32 %v572_v4 }
 0x16f   :  { %v639_v5 = vpop.eup %638 }
 0x170   :  { %585 = vst [vmem:[#allocation10 + $0x28] sm:$0xff] %v639_v5 }
 0x171   :  { %598 = dma.vmem_to_hbm [thread:$0]  %s591_s15, 768, %s593_s18, [#allocation4], %s769_s26, %s769_s26, %s770_s27  }
 0x172   :  { %766 = dma.done.wait [#allocation4], 768  }
 0x173   :  { %767 = vsyncadd [#allocation4], 4294966528 }
 0x174   :  { %603 = vsyncpa [#allocation3], 1 }
 0x175   :  { %604 = vsyncpa [#allocation6], 1 }
 0x176   :  { %605 = vsyncpa [#allocation9], 1 }
 0x177   :  { %606 = vsyncpa [#allocation4], 1 }

</bundles_post_ra>
